<compile_context>
chip_gen: v7x
topology: tpu7x:2x2x1
jax: 0.10.0
libtpu: 0.0.40
codegen_flags: <defaults>
</compile_context>

<pallas_src>
import jax
import jax.numpy as jnp
import numpy as np
from jax import lax
from jax.experimental import pallas as pl
from jax.experimental.pallas import tpu as pltpu

SUBLANE = 8  # f32 sublane tile


def rnn_kernel(x2_ref,         # (T*NP, 2D)  time-major, NP-padded: [x(t) | x(T-1-t)]
               w0_ih_ref,      # (2D, 2H)    block-diag(w0f_ih^T, w0b_ih^T)
               w0_hh_ref,      # (2H, 2H)    block-diag(w0f_hh^T, w0b_hh^T)
               b0_ref,         # (1, 2H)     [b0f | b0b]  (b_ih + b_hh per dir)
               w1f_ih_ref,     # (2H, H)
               w1f_hh_ref,     # (H, H)
               b1f_ref,        # (1, H)
               w1b_ih_ref,     # (2H, H)
               b1b_ref,        # (1, H)
               wlin_f_ref,     # (H, O)      linear head, fwd half of weight
               wlin_b_ref,     # (H, O)      linear head, bwd half of weight
               blin_ref,       # (1, O)
               out_ref,        # (NP, O)
               p0_seq,         # VMEM (T*NP, 2H): recurrence-ordered layer-0 projections
               h0_seq,         # VMEM (T*NP, 2H): layer-0 outputs, time-ordered [h0f | h0b]
               p1_seq):        # VMEM (T*NP, H) : bulk layer-1-fwd input projections
    NP = out_ref.shape[0]
    TN = x2_ref.shape[0]
    T = TN // NP
    H2 = w0_hh_ref.shape[0]
    H = H2 // 2

    # ---- bulk layer-0 input projection (both directions, ALL timesteps) ------
    # Row block t already holds [x(t) | x(T-1-t)]; block-diag w0_ih keeps the two
    # directions in their own lane halves -> recurrence-ordered, no per-step select.
    p0_seq[...] = (
        jnp.dot(x2_ref[...], w0_ih_ref[...], preferred_element_type=jnp.float32)
        + b0_ref[...])

    w0_hh = w0_hh_ref[...]
    # Lane masks only (store offsets are sublane-tile aligned since NP == 8k).
    # NOTE: re-verify masked-store cost if H2 ever exceeds 128 lanes.
    fwd_mask = lax.broadcasted_iota(jnp.int32, (NP, H2), 1) < H   # lanes [0:H]
    bwd_mask = jnp.logical_not(fwd_mask)

    # ---- fused layer-0 fwd+bwd recurrence (fully unrolled; T is static) ------
    # h[:, :H] = forward hidden after step t; h[:, H:] = backward hidden at
    # position T-1-t.  W_hh is block-diagonal so the two chains never mix.
    h = jnp.zeros((NP, H2), jnp.float32)
    for t in range(T):
        rt = T - 1 - t
        proj = p0_seq[pl.ds(t * NP, NP), :]          # one aligned slab per step
        h = jnp.tanh(proj + jnp.dot(h, w0_hh,
                                    preferred_element_type=jnp.float32))
        # Scatter into the time-ordered output scratch with two lane-masked,
        # sublane-aligned stores (off the critical path: next step depends on h).
        pltpu.store(h0_seq.at[pl.ds(t * NP, NP), :], h, mask=fwd_mask)
        pltpu.store(h0_seq.at[pl.ds(rt * NP, NP), :], h, mask=bwd_mask)

    # ---- bulk layer-1 forward input projection -------------------------------
    p1_seq[...] = (
        jnp.dot(h0_seq[...], w1f_ih_ref[...], preferred_element_type=jnp.float32)
        + b1f_ref[...])

    # ---- layer-1 forward recurrence (only the final hidden is needed) --------
    w1f_hh = w1f_hh_ref[...]
    h1 = jnp.zeros((NP, H), jnp.float32)
    for t in range(T):
        h1 = jnp.tanh(p1_seq[pl.ds(t * NP, NP), :]
                      + jnp.dot(h1, w1f_hh, preferred_element_type=jnp.float32))

    # ---- layer-1 backward: its output at t=T-1 is its FIRST step, so the
    # previous hidden is zero and weight_hh_l1_reverse drops out (biases remain).
    x_last = h0_seq[pl.ds((T - 1) * NP, NP), :]
    h1b = jnp.tanh(
        jnp.dot(x_last, w1b_ih_ref[...], preferred_element_type=jnp.float32)
        + b1b_ref[...])

    # ---- linear head on [h1_fwd(T-1) | h1_bwd(T-1)] ---------------------------
    out = (jnp.dot(h1, wlin_f_ref[...], preferred_element_type=jnp.float32)
           + jnp.dot(h1b, wlin_b_ref[...], preferred_element_type=jnp.float32)
           + blin_ref[...])
    out_ref[...] = out.astype(out_ref.dtype)


def pack_params(params):
    """One-time packing of the raw (PyTorch-layout) parameters for the kernel.

    Called ONCE (e.g. at model init); the forward pass then runs zero packing ops.
    """
    H = params["w0f_hh_t"].shape[0]
    D = params["w0f_ih_t"].shape[0]
    zDH = jnp.zeros((D, H), jnp.float32)
    zHH = jnp.zeros((H, H), jnp.float32)
    w0_ih = jnp.concatenate(
        [jnp.concatenate([params["w0f_ih_t"], zDH], axis=1),
         jnp.concatenate([zDH, params["w0b_ih_t"]], axis=1)], axis=0)   # (2D, 2H)
    w0_hh = jnp.concatenate(
        [jnp.concatenate([params["w0f_hh_t"], zHH], axis=1),
         jnp.concatenate([zHH, params["w0b_hh_t"]], axis=1)], axis=0)   # (2H, 2H)
    b0 = jnp.concatenate([params["b0f"], params["b0b"]], axis=1)        # (1, 2H)
    return {
        "w0_ih": w0_ih, "w0_hh": w0_hh, "b0": b0,
        "w1f_ih": params["w1f_ih_t"], "w1f_hh": params["w1f_hh_t"],
        "b1f": params["b1f"],
        "w1b_ih": params["w1b_ih_t"], "b1b": params["b1b"],
        "wlin_f": params["wlin_t"][:H], "wlin_b": params["wlin_t"][H:],
        "blin": params["blin"],
    }


def rnn_forward(x, packed):
    """x: (N, T, D) batch-first, like the PyTorch module.  packed: pack_params(...)."""
    N, T, D = x.shape
    H = packed["w1f_hh"].shape[0]
    O = packed["blin"].shape[1]
    H2 = 2 * H
    NP = max(SUBLANE, ((N + SUBLANE - 1) // SUBLANE) * SUBLANE)  # sublane-padded batch

    # Time-major, pad batch to a sublane tile, pack [x(t) | x(T-1-t)] per row block.
    x_tm = jnp.transpose(x, (1, 0, 2))                       # (T, N, D)
    if NP != N:
        x_tm = jnp.pad(x_tm, ((0, 0), (0, NP - N), (0, 0)))  # (T, NP, D)
    x2 = jnp.concatenate([x_tm, x_tm[::-1]], axis=-1)        # (T, NP, 2D)
    x2_flat = x2.reshape(T * NP, 2 * D)

    inputs = [
        x2_flat,
        packed["w0_ih"], packed["w0_hh"], packed["b0"],
        packed["w1f_ih"], packed["w1f_hh"], packed["b1f"],
        packed["w1b_ih"], packed["b1b"],
        packed["wlin_f"], packed["wlin_b"], packed["blin"],
    ]

    flops = 2 * (T * NP * (2 * D) * H2      # layer-0 bulk input projection
                 + T * NP * H2 * H2         # layer-0 recurrent matmuls
                 + T * NP * H2 * H          # layer-1 bulk input projection
                 + T * NP * H * H           # layer-1 fwd recurrent matmuls
                 + NP * H2 * H              # layer-1 bwd first step
                 + 2 * NP * H * O)          # linear head
    transcendentals = T * NP * H2 + T * NP * H + NP * H
    bytes_accessed = 4 * (x2_flat.size
                          + sum(int(v.size) for v in packed.values())
                          + NP * O)

    vmem = pl.BlockSpec(memory_space=pltpu.MemorySpace.VMEM)
    out = pl.pallas_call(
        rnn_kernel,
        out_shape=jax.ShapeDtypeStruct((NP, O), jnp.float32),
        in_specs=[vmem] * len(inputs),
        out_specs=vmem,
        scratch_shapes=[
            pltpu.VMEM((T * NP, H2), jnp.float32),   # layer-0 input projections
            pltpu.VMEM((T * NP, H2), jnp.float32),   # layer-0 outputs [fwd | bwd]
            pltpu.VMEM((T * NP, H), jnp.float32),    # layer-1 fwd input projections
        ],
        cost_estimate=pl.CostEstimate(flops=flops,
                                      transcendentals=transcendentals,
                                      bytes_accessed=bytes_accessed),
    )(*inputs)
    return out[:N]


# ---------------------------------------------------------------------------
# Pure-JAX reference (mirrors torch.nn.RNN semantics) for verification.
# ---------------------------------------------------------------------------
def rnn_reference(x, p):
    N, T, D = x.shape

    def run_dir(inp, w_ih_t, w_hh_t, b, reverse):
        H = w_hh_t.shape[0]
        h = jnp.zeros((N, H), jnp.float32)
        outs = [None] * T
        ts = range(T - 1, -1, -1) if reverse else range(T)
        for t in ts:
            h = jnp.tanh(inp[:, t] @ w_ih_t + h @ w_hh_t + b)
            outs[t] = h
        return jnp.stack(outs, axis=1)                            # (N, T, H)

    o0f = run_dir(x, p["w0f_ih_t"], p["w0f_hh_t"], p["b0f"], False)
    o0b = run_dir(x, p["w0b_ih_t"], p["w0b_hh_t"], p["b0b"], True)
    o0 = jnp.concatenate([o0f, o0b], axis=-1)                     # (N, T, 2H)
    o1f = run_dir(o0, p["w1f_ih_t"], p["w1f_hh_t"], p["b1f"], False)
    o1b = run_dir(o0, p["w1b_ih_t"], p["w1b_hh_t"], p["b1b"], True)
    last = jnp.concatenate([o1f[:, -1], o1b[:, -1]], axis=-1)     # (N, 2H)
    return last @ p["wlin_t"] + p["blin"]


def make_params(key, input_size, hidden_size, output_size):
    H, D, O = hidden_size, input_size, output_size
    scale = 1.0 / np.sqrt(H)
    ks = jax.random.split(key, 22)
    u = lambda k, shape: jax.random.uniform(k, shape, jnp.float32, -scale, scale)

    def layer(k0, k1, k2, k3, in_dim):
        w_ih = u(k0, (H, in_dim))       # PyTorch weight_ih_l*  (H, in)
        w_hh = u(k1, (H, H))            # PyTorch weight_hh_l*  (H, H)
        b_ih = u(k2, (H,))
        b_hh = u(k3, (H,))
        return w_ih.T, w_hh.T, (b_ih + b_hh).reshape(1, H)

    p = {}
    p["w0f_ih_t"], p["w0f_hh_t"], p["b0f"] = layer(ks[0], ks[1], ks[2], ks[3], D)
    p["w0b_ih_t"], p["w0b_hh_t"], p["b0b"] = layer(ks[4], ks[5], ks[6], ks[7], D)
    p["w1f_ih_t"], p["w1f_hh_t"], p["b1f"] = layer(ks[8], ks[9], ks[10], ks[11], 2 * H)
    p["w1b_ih_t"], p["w1b_hh_t"], p["b1b"] = layer(ks[12], ks[13], ks[14], ks[15], 2 * H)
    w_lin = u(ks[16], (O, 2 * H))       # nn.Linear weight (O, 2H)
    b_lin = u(ks[17], (O,))
    p["wlin_t"] = w_lin.T
    p["blin"] = b_lin.reshape(1, O)
    return p


if __name__ == "__main__":
    N, T, D = 2, 8, 4          # batch, sequence, input dims
    H, O = 32, 8               # hidden size, output classes

    key = jax.random.PRNGKey(0)
    kx, kp = jax.random.split(key)
    x = jax.random.normal(kx, (N, T, D), jnp.float32)
    params = make_params(kp, D, H, O)

    # One-time packing (hoisted out of the per-call path).
    packed = jax.tree_util.tree_map(jax.block_until_ready, pack_params(params))

    fwd = jax.jit(rnn_forward)
    out = fwd(x, packed)
    out = jax.block_until_ready(out)

    ref = rnn_reference(x, params)
    np.testing.assert_allclose(np.asarray(out), np.asarray(ref),
                               rtol=1e-3, atol=1e-3)
    print("KERNEL_OK")
</pallas_src>

<mosaic_0001>
module attributes {stable_mosaic.version = 11 : i64} {
  func.func @rnn_kernel(%arg0: memref<64x8xf32, #tpu.memory_space<vmem>>, %arg1: memref<8x64xf32, #tpu.memory_space<vmem>>, %arg2: memref<64x64xf32, #tpu.memory_space<vmem>>, %arg3: memref<1x64xf32, #tpu.memory_space<vmem>>, %arg4: memref<64x32xf32, #tpu.memory_space<vmem>>, %arg5: memref<32x32xf32, #tpu.memory_space<vmem>>, %arg6: memref<1x32xf32, #tpu.memory_space<vmem>>, %arg7: memref<64x32xf32, #tpu.memory_space<vmem>>, %arg8: memref<1x32xf32, #tpu.memory_space<vmem>>, %arg9: memref<32x8xf32, #tpu.memory_space<vmem>>, %arg10: memref<32x8xf32, #tpu.memory_space<vmem>>, %arg11: memref<1x8xf32, #tpu.memory_space<vmem>>, %arg12: memref<8x8xf32, #tpu.memory_space<vmem>>, %arg13: memref<64x64xf32, #tpu.memory_space<vmem>>, %arg14: memref<64x64xf32, #tpu.memory_space<vmem>>, %arg15: memref<64x32xf32, #tpu.memory_space<vmem>>) attributes {dimension_semantics = [], scalar_prefetch = 0 : i64, scratch_operands = 3 : i64, tpu.core_type = #tpu.core_type<tc>} {
    %c0 = arith.constant 0 : index
    %c0_0 = arith.constant 0 : index
    %0 = vector.load %arg0[%c0, %c0_0] : memref<64x8xf32, #tpu.memory_space<vmem>>, vector<64x8xf32>
    %c0_1 = arith.constant 0 : index
    %c0_2 = arith.constant 0 : index
    %1 = vector.load %arg1[%c0_1, %c0_2] : memref<8x64xf32, #tpu.memory_space<vmem>>, vector<8x64xf32>
    %cst = arith.constant dense<0.000000e+00> : vector<64x64xf32>
    %2 = tpu.matmul %0, %1, %cst {dimension_numbers = #tpu.dot_dimension_numbers<[1], [0], [0], [1], [0, 0, 1, 1], [], []>} : vector<64x8xf32>, vector<8x64xf32>, vector<64x64xf32> -> vector<64x64xf32>
    %c0_3 = arith.constant 0 : index
    %c0_4 = arith.constant 0 : index
    %3 = vector.load %arg3[%c0_3, %c0_4] : memref<1x64xf32, #tpu.memory_space<vmem>>, vector<1x64xf32>
    %4 = vector.broadcast %3 : vector<1x64xf32> to vector<64x64xf32>
    %5 = arith.addf %2, %4 : vector<64x64xf32>
    %c0_5 = arith.constant 0 : index
    %c0_6 = arith.constant 0 : index
    %6 = vector.load %arg13[%c0_5, %c0_6] : memref<64x64xf32, #tpu.memory_space<vmem>>, vector<64x64xf32>
    tpu.vector_store %arg13[%c0_5, %c0_6], %5 {strides = array<i32>} : memref<64x64xf32, #tpu.memory_space<vmem>>, vector<64x64xf32>,
    %c0_7 = arith.constant 0 : index
    %c0_8 = arith.constant 0 : index
    %7 = vector.load %arg2[%c0_7, %c0_8] : memref<64x64xf32, #tpu.memory_space<vmem>>, vector<64x64xf32>
    %8 = tpu.iota {dimensions = array<i32: 1>} : vector<8x64xi32>
    %c32_i32 = arith.constant 32 : i32
    %9 = vector.broadcast %c32_i32 : i32 to vector<8x64xi32>
    %10 = arith.cmpi slt, %8, %9 : vector<8x64xi32>
    %cst_9 = arith.constant dense<true> : vector<8x64xi1>
    %11 = arith.xori %10, %cst_9 : vector<8x64xi1>
    %cst_10 = arith.constant 0.000000e+00 : f32
    %12 = vector.broadcast %cst_10 : f32 to vector<8x64xf32>
    %c0_11 = arith.constant 0 : index
    %c0_12 = arith.constant 0 : index
    %13 = vector.load %arg13[%c0_11, %c0_12] : memref<64x64xf32, #tpu.memory_space<vmem>>, vector<8x64xf32>
    %cst_13 = arith.constant dense<0.000000e+00> : vector<8x64xf32>
    %14 = tpu.matmul %12, %7, %cst_13 {dimension_numbers = #tpu.dot_dimension_numbers<[1], [0], [0], [1], [0, 0, 1, 1], [], []>} : vector<8x64xf32>, vector<64x64xf32>, vector<8x64xf32> -> vector<8x64xf32>
    %15 = arith.addf %13, %14 : vector<8x64xf32>
    %16 = math.tanh %15 : vector<8x64xf32>
    %c0_14 = arith.constant 0 : index
    %c0_15 = arith.constant 0 : index
    %17 = vector.load %arg14[%c0_14, %c0_15] : memref<64x64xf32, #tpu.memory_space<vmem>>, vector<8x64xf32>
    tpu.vector_store %arg14[%c0_14, %c0_15], %16 masked %10 {strides = array<i32>} : memref<64x64xf32, #tpu.memory_space<vmem>>, vector<8x64xf32>, vector<8x64xi1>
    %c56 = arith.constant 56 : index
    %c0_16 = arith.constant 0 : index
    %18 = vector.load %arg14[%c56, %c0_16] : memref<64x64xf32, #tpu.memory_space<vmem>>, vector<8x64xf32>
    tpu.vector_store %arg14[%c56, %c0_16], %16 masked %11 {strides = array<i32>} : memref<64x64xf32, #tpu.memory_space<vmem>>, vector<8x64xf32>, vector<8x64xi1>
    %c8 = arith.constant 8 : index
    %c0_17 = arith.constant 0 : index
    %19 = vector.load %arg13[%c8, %c0_17] : memref<64x64xf32, #tpu.memory_space<vmem>>, vector<8x64xf32>
    %cst_18 = arith.constant dense<0.000000e+00> : vector<8x64xf32>
    %20 = tpu.matmul %16, %7, %cst_18 {dimension_numbers = #tpu.dot_dimension_numbers<[1], [0], [0], [1], [0, 0, 1, 1], [], []>} : vector<8x64xf32>, vector<64x64xf32>, vector<8x64xf32> -> vector<8x64xf32>
    %21 = arith.addf %19, %20 : vector<8x64xf32>
    %22 = math.tanh %21 : vector<8x64xf32>
    %c8_19 = arith.constant 8 : index
    %c0_20 = arith.constant 0 : index
    %23 = vector.load %arg14[%c8_19, %c0_20] : memref<64x64xf32, #tpu.memory_space<vmem>>, vector<8x64xf32>
    tpu.vector_store %arg14[%c8_19, %c0_20], %22 masked %10 {strides = array<i32>} : memref<64x64xf32, #tpu.memory_space<vmem>>, vector<8x64xf32>, vector<8x64xi1>
    %c48 = arith.constant 48 : index
    %c0_21 = arith.constant 0 : index
    %24 = vector.load %arg14[%c48, %c0_21] : memref<64x64xf32, #tpu.memory_space<vmem>>, vector<8x64xf32>
    tpu.vector_store %arg14[%c48, %c0_21], %22 masked %11 {strides = array<i32>} : memref<64x64xf32, #tpu.memory_space<vmem>>, vector<8x64xf32>, vector<8x64xi1>
    %c16 = arith.constant 16 : index
    %c0_22 = arith.constant 0 : index
    %25 = vector.load %arg13[%c16, %c0_22] : memref<64x64xf32, #tpu.memory_space<vmem>>, vector<8x64xf32>
    %cst_23 = arith.constant dense<0.000000e+00> : vector<8x64xf32>
    %26 = tpu.matmul %22, %7, %cst_23 {dimension_numbers = #tpu.dot_dimension_numbers<[1], [0], [0], [1], [0, 0, 1, 1], [], []>} : vector<8x64xf32>, vector<64x64xf32>, vector<8x64xf32> -> vector<8x64xf32>
    %27 = arith.addf %25, %26 : vector<8x64xf32>
    %28 = math.tanh %27 : vector<8x64xf32>
    %c16_24 = arith.constant 16 : index
    %c0_25 = arith.constant 0 : index
    %29 = vector.load %arg14[%c16_24, %c0_25] : memref<64x64xf32, #tpu.memory_space<vmem>>, vector<8x64xf32>
    tpu.vector_store %arg14[%c16_24, %c0_25], %28 masked %10 {strides = array<i32>} : memref<64x64xf32, #tpu.memory_space<vmem>>, vector<8x64xf32>, vector<8x64xi1>
    %c40 = arith.constant 40 : index
    %c0_26 = arith.constant 0 : index
    %30 = vector.load %arg14[%c40, %c0_26] : memref<64x64xf32, #tpu.memory_space<vmem>>, vector<8x64xf32>
    tpu.vector_store %arg14[%c40, %c0_26], %28 masked %11 {strides = array<i32>} : memref<64x64xf32, #tpu.memory_space<vmem>>, vector<8x64xf32>, vector<8x64xi1>
    %c24 = arith.constant 24 : index
    %c0_27 = arith.constant 0 : index
    %31 = vector.load %arg13[%c24, %c0_27] : memref<64x64xf32, #tpu.memory_space<vmem>>, vector<8x64xf32>
    %cst_28 = arith.constant dense<0.000000e+00> : vector<8x64xf32>
    %32 = tpu.matmul %28, %7, %cst_28 {dimension_numbers = #tpu.dot_dimension_numbers<[1], [0], [0], [1], [0, 0, 1, 1], [], []>} : vector<8x64xf32>, vector<64x64xf32>, vector<8x64xf32> -> vector<8x64xf32>
    %33 = arith.addf %31, %32 : vector<8x64xf32>
    %34 = math.tanh %33 : vector<8x64xf32>
    %c24_29 = arith.constant 24 : index
    %c0_30 = arith.constant 0 : index
    %35 = vector.load %arg14[%c24_29, %c0_30] : memref<64x64xf32, #tpu.memory_space<vmem>>, vector<8x64xf32>
    tpu.vector_store %arg14[%c24_29, %c0_30], %34 masked %10 {strides = array<i32>} : memref<64x64xf32, #tpu.memory_space<vmem>>, vector<8x64xf32>, vector<8x64xi1>
    %c32 = arith.constant 32 : index
    %c0_31 = arith.constant 0 : index
    %36 = vector.load %arg14[%c32, %c0_31] : memref<64x64xf32, #tpu.memory_space<vmem>>, vector<8x64xf32>
    tpu.vector_store %arg14[%c32, %c0_31], %34 masked %11 {strides = array<i32>} : memref<64x64xf32, #tpu.memory_space<vmem>>, vector<8x64xf32>, vector<8x64xi1>
    %c32_32 = arith.constant 32 : index
    %c0_33 = arith.constant 0 : index
    %37 = vector.load %arg13[%c32_32, %c0_33] : memref<64x64xf32, #tpu.memory_space<vmem>>, vector<8x64xf32>
    %cst_34 = arith.constant dense<0.000000e+00> : vector<8x64xf32>
    %38 = tpu.matmul %34, %7, %cst_34 {dimension_numbers = #tpu.dot_dimension_numbers<[1], [0], [0], [1], [0, 0, 1, 1], [], []>} : vector<8x64xf32>, vector<64x64xf32>, vector<8x64xf32> -> vector<8x64xf32>
    %39 = arith.addf %37, %38 : vector<8x64xf32>
    %40 = math.tanh %39 : vector<8x64xf32>
    %c32_35 = arith.constant 32 : index
    %c0_36 = arith.constant 0 : index
    %41 = vector.load %arg14[%c32_35, %c0_36] : memref<64x64xf32, #tpu.memory_space<vmem>>, vector<8x64xf32>
    tpu.vector_store %arg14[%c32_35, %c0_36], %40 masked %10 {strides = array<i32>} : memref<64x64xf32, #tpu.memory_space<vmem>>, vector<8x64xf32>, vector<8x64xi1>
    %c24_37 = arith.constant 24 : index
    %c0_38 = arith.constant 0 : index
    %42 = vector.load %arg14[%c24_37, %c0_38] : memref<64x64xf32, #tpu.memory_space<vmem>>, vector<8x64xf32>
    tpu.vector_store %arg14[%c24_37, %c0_38], %40 masked %11 {strides = array<i32>} : memref<64x64xf32, #tpu.memory_space<vmem>>, vector<8x64xf32>, vector<8x64xi1>
    %c40_39 = arith.constant 40 : index
    %c0_40 = arith.constant 0 : index
    %43 = vector.load %arg13[%c40_39, %c0_40] : memref<64x64xf32, #tpu.memory_space<vmem>>, vector<8x64xf32>
    %cst_41 = arith.constant dense<0.000000e+00> : vector<8x64xf32>
    %44 = tpu.matmul %40, %7, %cst_41 {dimension_numbers = #tpu.dot_dimension_numbers<[1], [0], [0], [1], [0, 0, 1, 1], [], []>} : vector<8x64xf32>, vector<64x64xf32>, vector<8x64xf32> -> vector<8x64xf32>
    %45 = arith.addf %43, %44 : vector<8x64xf32>
    %46 = math.tanh %45 : vector<8x64xf32>
    %c40_42 = arith.constant 40 : index
    %c0_43 = arith.constant 0 : index
    %47 = vector.load %arg14[%c40_42, %c0_43] : memref<64x64xf32, #tpu.memory_space<vmem>>, vector<8x64xf32>
    tpu.vector_store %arg14[%c40_42, %c0_43], %46 masked %10 {strides = array<i32>} : memref<64x64xf32, #tpu.memory_space<vmem>>, vector<8x64xf32>, vector<8x64xi1>
    %c16_44 = arith.constant 16 : index
    %c0_45 = arith.constant 0 : index
    %48 = vector.load %arg14[%c16_44, %c0_45] : memref<64x64xf32, #tpu.memory_space<vmem>>, vector<8x64xf32>
    tpu.vector_store %arg14[%c16_44, %c0_45], %46 masked %11 {strides = array<i32>} : memref<64x64xf32, #tpu.memory_space<vmem>>, vector<8x64xf32>, vector<8x64xi1>
    %c48_46 = arith.constant 48 : index
    %c0_47 = arith.constant 0 : index
    %49 = vector.load %arg13[%c48_46, %c0_47] : memref<64x64xf32, #tpu.memory_space<vmem>>, vector<8x64xf32>
    %cst_48 = arith.constant dense<0.000000e+00> : vector<8x64xf32>
    %50 = tpu.matmul %46, %7, %cst_48 {dimension_numbers = #tpu.dot_dimension_numbers<[1], [0], [0], [1], [0, 0, 1, 1], [], []>} : vector<8x64xf32>, vector<64x64xf32>, vector<8x64xf32> -> vector<8x64xf32>
    %51 = arith.addf %49, %50 : vector<8x64xf32>
    %52 = math.tanh %51 : vector<8x64xf32>
    %c48_49 = arith.constant 48 : index
    %c0_50 = arith.constant 0 : index
    %53 = vector.load %arg14[%c48_49, %c0_50] : memref<64x64xf32, #tpu.memory_space<vmem>>, vector<8x64xf32>
    tpu.vector_store %arg14[%c48_49, %c0_50], %52 masked %10 {strides = array<i32>} : memref<64x64xf32, #tpu.memory_space<vmem>>, vector<8x64xf32>, vector<8x64xi1>
    %c8_51 = arith.constant 8 : index
    %c0_52 = arith.constant 0 : index
    %54 = vector.load %arg14[%c8_51, %c0_52] : memref<64x64xf32, #tpu.memory_space<vmem>>, vector<8x64xf32>
    tpu.vector_store %arg14[%c8_51, %c0_52], %52 masked %11 {strides = array<i32>} : memref<64x64xf32, #tpu.memory_space<vmem>>, vector<8x64xf32>, vector<8x64xi1>
    %c56_53 = arith.constant 56 : index
    %c0_54 = arith.constant 0 : index
    %55 = vector.load %arg13[%c56_53, %c0_54] : memref<64x64xf32, #tpu.memory_space<vmem>>, vector<8x64xf32>
    %cst_55 = arith.constant dense<0.000000e+00> : vector<8x64xf32>
    %56 = tpu.matmul %52, %7, %cst_55 {dimension_numbers = #tpu.dot_dimension_numbers<[1], [0], [0], [1], [0, 0, 1, 1], [], []>} : vector<8x64xf32>, vector<64x64xf32>, vector<8x64xf32> -> vector<8x64xf32>
    %57 = arith.addf %55, %56 : vector<8x64xf32>
    %58 = math.tanh %57 : vector<8x64xf32>
    %c56_56 = arith.constant 56 : index
    %c0_57 = arith.constant 0 : index
    %59 = vector.load %arg14[%c56_56, %c0_57] : memref<64x64xf32, #tpu.memory_space<vmem>>, vector<8x64xf32>
    tpu.vector_store %arg14[%c56_56, %c0_57], %58 masked %10 {strides = array<i32>} : memref<64x64xf32, #tpu.memory_space<vmem>>, vector<8x64xf32>, vector<8x64xi1>
    %c0_58 = arith.constant 0 : index
    %c0_59 = arith.constant 0 : index
    %60 = vector.load %arg14[%c0_58, %c0_59] : memref<64x64xf32, #tpu.memory_space<vmem>>, vector<8x64xf32>
    tpu.vector_store %arg14[%c0_58, %c0_59], %58 masked %11 {strides = array<i32>} : memref<64x64xf32, #tpu.memory_space<vmem>>, vector<8x64xf32>, vector<8x64xi1>
    %c0_60 = arith.constant 0 : index
    %c0_61 = arith.constant 0 : index
    %61 = vector.load %arg14[%c0_60, %c0_61] : memref<64x64xf32, #tpu.memory_space<vmem>>, vector<64x64xf32>
    %c0_62 = arith.constant 0 : index
    %c0_63 = arith.constant 0 : index
    %62 = vector.load %arg4[%c0_62, %c0_63] : memref<64x32xf32, #tpu.memory_space<vmem>>, vector<64x32xf32>
    %cst_64 = arith.constant dense<0.000000e+00> : vector<64x32xf32>
    %63 = tpu.matmul %61, %62, %cst_64 {dimension_numbers = #tpu.dot_dimension_numbers<[1], [0], [0], [1], [0, 0, 1, 1], [], []>} : vector<64x64xf32>, vector<64x32xf32>, vector<64x32xf32> -> vector<64x32xf32>
    %c0_65 = arith.constant 0 : index
    %c0_66 = arith.constant 0 : index
    %64 = vector.load %arg6[%c0_65, %c0_66] : memref<1x32xf32, #tpu.memory_space<vmem>>, vector<1x32xf32>
    %65 = vector.broadcast %64 : vector<1x32xf32> to vector<64x32xf32>
    %66 = arith.addf %63, %65 : vector<64x32xf32>
    %c0_67 = arith.constant 0 : index
    %c0_68 = arith.constant 0 : index
    %67 = vector.load %arg15[%c0_67, %c0_68] : memref<64x32xf32, #tpu.memory_space<vmem>>, vector<64x32xf32>
    tpu.vector_store %arg15[%c0_67, %c0_68], %66 {strides = array<i32>} : memref<64x32xf32, #tpu.memory_space<vmem>>, vector<64x32xf32>,
    %c0_69 = arith.constant 0 : index
    %c0_70 = arith.constant 0 : index
    %68 = vector.load %arg5[%c0_69, %c0_70] : memref<32x32xf32, #tpu.memory_space<vmem>>, vector<32x32xf32>
    %cst_71 = arith.constant 0.000000e+00 : f32
    %69 = vector.broadcast %cst_71 : f32 to vector<8x32xf32>
    %c0_72 = arith.constant 0 : index
    %c0_73 = arith.constant 0 : index
    %70 = vector.load %arg15[%c0_72, %c0_73] : memref<64x32xf32, #tpu.memory_space<vmem>>, vector<8x32xf32>
    %cst_74 = arith.constant dense<0.000000e+00> : vector<8x32xf32>
    %71 = tpu.matmul %69, %68, %cst_74 {dimension_numbers = #tpu.dot_dimension_numbers<[1], [0], [0], [1], [0, 0, 1, 1], [], []>} : vector<8x32xf32>, vector<32x32xf32>, vector<8x32xf32> -> vector<8x32xf32>
    %72 = arith.addf %70, %71 : vector<8x32xf32>
    %73 = math.tanh %72 : vector<8x32xf32>
    %c8_75 = arith.constant 8 : index
    %c0_76 = arith.constant 0 : index
    %74 = vector.load %arg15[%c8_75, %c0_76] : memref<64x32xf32, #tpu.memory_space<vmem>>, vector<8x32xf32>
    %cst_77 = arith.constant dense<0.000000e+00> : vector<8x32xf32>
    %75 = tpu.matmul %73, %68, %cst_77 {dimension_numbers = #tpu.dot_dimension_numbers<[1], [0], [0], [1], [0, 0, 1, 1], [], []>} : vector<8x32xf32>, vector<32x32xf32>, vector<8x32xf32> -> vector<8x32xf32>
    %76 = arith.addf %74, %75 : vector<8x32xf32>
    %77 = math.tanh %76 : vector<8x32xf32>
    %c16_78 = arith.constant 16 : index
    %c0_79 = arith.constant 0 : index
    %78 = vector.load %arg15[%c16_78, %c0_79] : memref<64x32xf32, #tpu.memory_space<vmem>>, vector<8x32xf32>
    %cst_80 = arith.constant dense<0.000000e+00> : vector<8x32xf32>
    %79 = tpu.matmul %77, %68, %cst_80 {dimension_numbers = #tpu.dot_dimension_numbers<[1], [0], [0], [1], [0, 0, 1, 1], [], []>} : vector<8x32xf32>, vector<32x32xf32>, vector<8x32xf32> -> vector<8x32xf32>
    %80 = arith.addf %78, %79 : vector<8x32xf32>
    %81 = math.tanh %80 : vector<8x32xf32>
    %c24_81 = arith.constant 24 : index
    %c0_82 = arith.constant 0 : index
    %82 = vector.load %arg15[%c24_81, %c0_82] : memref<64x32xf32, #tpu.memory_space<vmem>>, vector<8x32xf32>
    %cst_83 = arith.constant dense<0.000000e+00> : vector<8x32xf32>
    %83 = tpu.matmul %81, %68, %cst_83 {dimension_numbers = #tpu.dot_dimension_numbers<[1], [0], [0], [1], [0, 0, 1, 1], [], []>} : vector<8x32xf32>, vector<32x32xf32>, vector<8x32xf32> -> vector<8x32xf32>
    %84 = arith.addf %82, %83 : vector<8x32xf32>
    %85 = math.tanh %84 : vector<8x32xf32>
    %c32_84 = arith.constant 32 : index
    %c0_85 = arith.constant 0 : index
    %86 = vector.load %arg15[%c32_84, %c0_85] : memref<64x32xf32, #tpu.memory_space<vmem>>, vector<8x32xf32>
    %cst_86 = arith.constant dense<0.000000e+00> : vector<8x32xf32>
    %87 = tpu.matmul %85, %68, %cst_86 {dimension_numbers = #tpu.dot_dimension_numbers<[1], [0], [0], [1], [0, 0, 1, 1], [], []>} : vector<8x32xf32>, vector<32x32xf32>, vector<8x32xf32> -> vector<8x32xf32>
    %88 = arith.addf %86, %87 : vector<8x32xf32>
    %89 = math.tanh %88 : vector<8x32xf32>
    %c40_87 = arith.constant 40 : index
    %c0_88 = arith.constant 0 : index
    %90 = vector.load %arg15[%c40_87, %c0_88] : memref<64x32xf32, #tpu.memory_space<vmem>>, vector<8x32xf32>
    %cst_89 = arith.constant dense<0.000000e+00> : vector<8x32xf32>
    %91 = tpu.matmul %89, %68, %cst_89 {dimension_numbers = #tpu.dot_dimension_numbers<[1], [0], [0], [1], [0, 0, 1, 1], [], []>} : vector<8x32xf32>, vector<32x32xf32>, vector<8x32xf32> -> vector<8x32xf32>
    %92 = arith.addf %90, %91 : vector<8x32xf32>
    %93 = math.tanh %92 : vector<8x32xf32>
    %c48_90 = arith.constant 48 : index
    %c0_91 = arith.constant 0 : index
    %94 = vector.load %arg15[%c48_90, %c0_91] : memref<64x32xf32, #tpu.memory_space<vmem>>, vector<8x32xf32>
    %cst_92 = arith.constant dense<0.000000e+00> : vector<8x32xf32>
    %95 = tpu.matmul %93, %68, %cst_92 {dimension_numbers = #tpu.dot_dimension_numbers<[1], [0], [0], [1], [0, 0, 1, 1], [], []>} : vector<8x32xf32>, vector<32x32xf32>, vector<8x32xf32> -> vector<8x32xf32>
    %96 = arith.addf %94, %95 : vector<8x32xf32>
    %97 = math.tanh %96 : vector<8x32xf32>
    %c56_93 = arith.constant 56 : index
    %c0_94 = arith.constant 0 : index
    %98 = vector.load %arg15[%c56_93, %c0_94] : memref<64x32xf32, #tpu.memory_space<vmem>>, vector<8x32xf32>
    %cst_95 = arith.constant dense<0.000000e+00> : vector<8x32xf32>
    %99 = tpu.matmul %97, %68, %cst_95 {dimension_numbers = #tpu.dot_dimension_numbers<[1], [0], [0], [1], [0, 0, 1, 1], [], []>} : vector<8x32xf32>, vector<32x32xf32>, vector<8x32xf32> -> vector<8x32xf32>
    %100 = arith.addf %98, %99 : vector<8x32xf32>
    %101 = math.tanh %100 : vector<8x32xf32>
    %c56_96 = arith.constant 56 : index
    %c0_97 = arith.constant 0 : index
    %102 = vector.load %arg14[%c56_96, %c0_97] : memref<64x64xf32, #tpu.memory_space<vmem>>, vector<8x64xf32>
    %c0_98 = arith.constant 0 : index
    %c0_99 = arith.constant 0 : index
    %103 = vector.load %arg7[%c0_98, %c0_99] : memref<64x32xf32, #tpu.memory_space<vmem>>, vector<64x32xf32>
    %cst_100 = arith.constant dense<0.000000e+00> : vector<8x32xf32>
    %104 = tpu.matmul %102, %103, %cst_100 {dimension_numbers = #tpu.dot_dimension_numbers<[1], [0], [0], [1], [0, 0, 1, 1], [], []>} : vector<8x64xf32>, vector<64x32xf32>, vector<8x32xf32> -> vector<8x32xf32>
    %c0_101 = arith.constant 0 : index
    %c0_102 = arith.constant 0 : index
    %105 = vector.load %arg8[%c0_101, %c0_102] : memref<1x32xf32, #tpu.memory_space<vmem>>, vector<1x32xf32>
    %106 = vector.broadcast %105 : vector<1x32xf32> to vector<8x32xf32>
    %107 = arith.addf %104, %106 : vector<8x32xf32>
    %108 = math.tanh %107 : vector<8x32xf32>
    %c0_103 = arith.constant 0 : index
    %c0_104 = arith.constant 0 : index
    %109 = vector.load %arg9[%c0_103, %c0_104] : memref<32x8xf32, #tpu.memory_space<vmem>>, vector<32x8xf32>
    %cst_105 = arith.constant dense<0.000000e+00> : vector<8x8xf32>
    %110 = tpu.matmul %101, %109, %cst_105 {dimension_numbers = #tpu.dot_dimension_numbers<[1], [0], [0], [1], [0, 0, 1, 1], [], []>} : vector<8x32xf32>, vector<32x8xf32>, vector<8x8xf32> -> vector<8x8xf32>
    %c0_106 = arith.constant 0 : index
    %c0_107 = arith.constant 0 : index
    %111 = vector.load %arg10[%c0_106, %c0_107] : memref<32x8xf32, #tpu.memory_space<vmem>>, vector<32x8xf32>
    %cst_108 = arith.constant dense<0.000000e+00> : vector<8x8xf32>
    %112 = tpu.matmul %108, %111, %cst_108 {dimension_numbers = #tpu.dot_dimension_numbers<[1], [0], [0], [1], [0, 0, 1, 1], [], []>} : vector<8x32xf32>, vector<32x8xf32>, vector<8x8xf32> -> vector<8x8xf32>
    %113 = arith.addf %110, %112 : vector<8x8xf32>
    %c0_109 = arith.constant 0 : index
    %c0_110 = arith.constant 0 : index
    %114 = vector.load %arg11[%c0_109, %c0_110] : memref<1x8xf32, #tpu.memory_space<vmem>>, vector<1x8xf32>
    %115 = vector.broadcast %114 : vector<1x8xf32> to vector<8x8xf32>
    %116 = arith.addf %113, %115 : vector<8x8xf32>
    %c0_111 = arith.constant 0 : index
    %c0_112 = arith.constant 0 : index
    %117 = vector.load %arg12[%c0_111, %c0_112] : memref<8x8xf32, #tpu.memory_space<vmem>>, vector<8x8xf32>
    tpu.vector_store %arg12[%c0_111, %c0_112], %116 {strides = array<i32>} : memref<8x8xf32, #tpu.memory_space<vmem>>, vector<8x8xf32>,
    return
  }
}

</mosaic_0001>

<bundles_post_ra>
// kernel: rnn_forward.1
= control target key start
LH: loop header
LB: loop body
LE: loop exit
PB: predicated region body
PF: predicated region fallthrough
CT: control target
= control target key end

     0   :  { %vm57_vm0 = vcmask 64512   ;;  %v2601_v0 = vmov 0.0|0.0   ;;  %vm2602_vm1 = vmmov 0   ;;  %v2603_v4 = vmov 0.0   ;;  %s3072_s2 = inlined_call_operand.vmem [shape: f32[64,64], index: 2, kind: input, shape index: {}]   ;;  %s3073_s1 = inlined_call_operand.vmem [shape: f32[8,64], index: 1, kind: input, shape index: {}]   ;;  %s3074_s0 = inlined_call_operand.vmem [shape: f32[64,8], index: 0, kind: input, shape index: {}]   ;;  %s3075_s3 = inlined_call_operand.vmem [shape: f32[1,64], index: 3, kind: input, shape index: {}]   ;;  %s3076_s4 = inlined_call_operand.vmem [shape: f32[64,32], index: 4, kind: input, shape index: {}]   ;;  %s3077_s5 = inlined_call_operand.vmem [shape: f32[32,32], index: 5, kind: input, shape index: {}]   ;;  %s3078_s6 = inlined_call_operand.vmem [shape: f32[1,32], index: 6, kind: input, shape index: {}]   ;;  %s3079_s7 = inlined_call_operand.vmem [shape: f32[64,32], index: 7, kind: input, shape index: {}]   ;;  %s3080_s10 = inlined_call_operand.vmem [shape: f32[32,8], index: 10, kind: input, shape index: {}]   ;;  %s3081_s8 = inlined_call_operand.vmem [shape: f32[1,32], index: 8, kind: input, shape index: {}]   ;;  %s3082_s9 = inlined_call_operand.vmem [shape: f32[32,8], index: 9, kind: input, shape index: {}]   ;;  %s3083_s11 = inlined_call_operand.vmem [shape: f32[1,8], index: 11, kind: input, shape index: {}]   ;;  %s3084_s12 = inlined_call_operand.vmem [shape: f32[8,8], index: 12, kind: output, shape index: {}]  }
   0x1   :  { %2379 = vmatprep.subr.bf16.mxu1 %v2601_v0  ;;  %v196_v1 = vld [vmem:[%s3072_s2] sm:$0xff]  ;;  %v197_v2 = vld [vmem:[%s3072_s2 + $0x8] sm:$0xff]  ;;  %2086 = vmatprep.mubr.msk.f32.mxu1 %vm2602_vm1, %v2603_v4  ;;  %v198_v8 = vld [vmem:[%s3072_s2 + $0x10] sm:$0xff]  ;;  %vm187_vm2 = vcmask 523264   ;;  %v204_v28 = vlaneseq  ;;  %vm2604_vm4 = vmmov 1   ;;  %vm986_vm8 = vcmask 261120  }
   0x2   :  { %v49_v3 = vld [vmem:[%s3073_s1] sm:$0xff]  ;;  %v2682_v5 = vpack.c.bf16 %v197_v2, %v196_v1  ;;  %v42_v7 = vld [vmem:[%s3074_s0 + $0x8] sm:$0xff]  ;;  %v199_v9 = vld [vmem:[%s3072_s2 + $0x18] sm:$0xff] }
   0x3   :  { %2056 = vmatprep.subr.mxu0 %v49_v3  ;;  %v41_v6 = vld [vmem:[%s3074_s0] sm:$0xff]  ;;  %v2699_v10 = vpack.c.bf16 %v199_v9, %v198_v8  ;;  %v201_v12 = vld [vmem:[%s3072_s2 + $0x28] sm:$0xff]  ;;  %v202_v14 = vld [vmem:[%s3072_s2 + $0x30] sm:$0xff]  ;;  %v205_v31 = vand.u32 127, %v204_v28 }
   0x4   :  { %2057 = vmatpush3.msra.mxu0 %v49_v3  ;;  %2058 = vmatprep.mubr.msk.f32.mxu0 %vm57_vm0, %v41_v6  ;;  %v200_v11 = vld [vmem:[%s3072_s2 + $0x20] sm:$0xff]  ;;  %v203_v15 = vld [vmem:[%s3072_s2 + $0x38] sm:$0xff]  ;;  %v43_v17 = vld [vmem:[%s3074_s0 + $0x10] sm:$0xff] }
   0x5   :  { %2381 = vmatpush3.bf16.msra.mxu1 %v2682_v5  ;;  %2059 = vmatmul.mubr.msk.f32.vlgmr.msra.gmra.mrb[0].mxu0 %vm57_vm0, %v42_v7  ;;  %v2712_v13 = vpack.c.bf16 %v201_v12, %v200_v11  ;;  %v2724_v16 = vpack.c.bf16 %v203_v15, %v202_v14  ;;  %v44_v18 = vld [vmem:[%s3074_s0 + $0x18] sm:$0xff]  ;;  %v45_v19 = vld [vmem:[%s3074_s0 + $0x20] sm:$0xff]  ;;  %v46_v20 = vld [vmem:[%s3074_s0 + $0x28] sm:$0xff]  ;;  %vm206_vm3 = vcmp.lt.s32.totalorder %v205_v31, 32 }
   0x6   :  { %2382 = vmatprep.subr.bf16.mxu1 %v2601_v0  ;;  %2391 = vmatprep.subr.bf16.mxu0 %v2601_v0  ;;  %v47_v21 = vld [vmem:[%s3074_s0 + $0x30] sm:$0xff]  ;;  %v48_v22 = vld [vmem:[%s3074_s0 + $0x38] sm:$0xff]  ;;  %v1863_v23 = vld [vmem:[%s3075_s3] ss:$0 sm:$0xff] }
   0x7   :  { %2393 = vmatpush3.bf16.msra.mxu0 %v2682_v5  ;;  %2061 = vmatprep.mubr.msk.f32.mxu0 %vm57_vm0, %v43_v17  ;;  %vm207_vm5 = vmxor %vm206_vm3, %vm2604_vm4  ;;  %v842_v17 = vld [vmem:[%s3076_s4] sm:$0xff] }
   0x8   :  { %2394 = vmatprep.subr.bf16.mxu0 %v2601_v0  ;;  %vm2776_vm6 = vmand %vm187_vm2, %vm206_vm3 }
   0x9   :  { %2384 = vmatpush3.bf16.msra.mxu1 %v2699_v10  ;;  %2062 = vmatmul.mubr.msk.f32.gmra.mrb[2].mxu0 %vm57_vm0, %v44_v18  ;;  %vm2781_vm7 = vmand %vm187_vm2, %vm207_vm5  ;;  %v843_v18 = vld [vmem:[%s3076_s4 + $0x8] sm:$0xff] }
   0xa   :  { %2385 = vmatprep.subr.bf16.mxu1 %v2601_v0  ;;  %2064 = vmatprep.mubr.msk.f32.mxu0 %vm57_vm0, %v45_v19  ;;  %v2475_v19 = vpack.c.bf16 %v843_v18, %v842_v17 }
   0xb   :  { %2396 = vmatpush3.bf16.msra.mxu0 %v2699_v10 }
   0xc   :  { %2397 = vmatprep.subr.bf16.mxu0 %v2601_v0 }
   0xd   :  { %2387 = vmatpush3.bf16.msra.mxu1 %v2712_v13  ;;  %2065 = vmatmul.mubr.msk.f32.gmra.mrb[4].mxu0 %vm57_vm0, %v46_v20  ;;  %v844_v20 = vld [vmem:[%s3076_s4 + $0x10] sm:$0xff] }
   0xe   :  { %2388 = vmatprep.subr.bf16.mxu1 %v2601_v0  ;;  %2067 = vmatprep.mubr.msk.f32.mxu0 %vm57_vm0, %v47_v21  ;;  %v845_v21 = vld [vmem:[%s3076_s4 + $0x18] sm:$0xff] }
   0xf   :  { %2399 = vmatpush3.bf16.msra.mxu0 %v2712_v13 }
  0x10   :  { %2400 = vmatprep.subr.bf16.mxu0 %v2601_v0 }
  0x11   :  { %2390 = vmatpush3.bf16.msra.mxu1 %v2724_v16  ;;  %2068 = vmatmul.mubr.msk.f32.gmra.mrb[6].mxu0 %vm57_vm0, %v48_v22  ;;  %v2479_v22 = vpack.c.bf16 %v845_v21, %v844_v20 }
  0x12   :  { %2403 = vmatprep.subr.bf16.mxu1 %v2601_v0  ;;  %2105 = vmatprep.mubr.msk.f32.mxu0 %vm2602_vm1, %v2603_v4 }
  0x13   :  { %2402 = vmatpush3.bf16.msra.mxu0 %v2724_v16 }
  0x14   :  { %2087 = vmatmul.mubr.f32.vlgmr.msra.gmra.mrb[0].mxu1 %v2603_v4  ;;  %2415 = vmatprep.subr.bf16.mxu0 %v2601_v0 }
  0x15   :  { %2405 = vmatpush3.bf16.msra.mxu1 %v2682_v5  ;;  %2124 = vmatprep.mubr.msk.f32.mxu1 %vm2602_vm1, %v2603_v4 }
  0x16   :  { %2406 = vmatprep.subr.bf16.mxu1 %v2601_v0 }
  0x19   :  { %2408 = vmatpush3.bf16.msra.mxu1 %v2699_v10 }
  0x1a   :  { %2409 = vmatprep.subr.bf16.mxu1 %v2601_v0 }
  0x1d   :  { %2411 = vmatpush3.bf16.msra.mxu1 %v2712_v13 }
  0x1e   :  { %2412 = vmatprep.subr.bf16.mxu1 %v2601_v0 }
  0x21   :  { %2414 = vmatpush3.bf16.msra.mxu1 %v2724_v16 }
  0x22   :  { %2427 = vmatprep.subr.bf16.mxu1 %v2601_v0 }
  0xd8   :  { %v2060_v24 = vpop.f32.mrb[0].mxu0 }
  0xd9   :  { %v154_v25 = vadd.f32 %v2060_v24, %v1863_v23  ;;  %v148_v26 = vpop.f32.mrb[1].mxu0  ;;  %v847_v24 = vld [vmem:[%s3076_s4 + $0x28] sm:$0xff] }
  0xda   :  { %v149_v27 = vadd.f32 %v1863_v23, %v148_v26  ;;  %v848_v26 = vld [vmem:[%s3076_s4 + $0x30] sm:$0xff] }
  0xdb   :  { %189 = vst.msk [vmem:[#allocation2 + $0x8] sm:$0xff] %vm187_vm2, %v154_v25 }
  0xdc   :  { %188 = vst.msk [vmem:[#allocation2] sm:$0xff] %vm187_vm2, %v149_v27  ;;  %v2063_v37 = vpop.f32.mrb[2].mxu0  ;;  %v849_v27 = vld [vmem:[%s3076_s4 + $0x38] sm:$0xff] }
  0xdd   :  { %v164_v38 = vadd.f32 %v2063_v37, %v1863_v23  ;;  %v158_v39 = vpop.f32.mrb[3].mxu0  ;;  %v2487_v28 = vpack.c.bf16 %v849_v27, %v848_v26 }
  0xde   :  { %v159_v40 = vadd.f32 %v1863_v23, %v158_v39 }
  0xdf   :  { %191 = vst.msk [vmem:[#allocation2 + $0x18] sm:$0xff] %vm187_vm2, %v164_v38 }
  0xe0   :  { %190 = vst.msk [vmem:[#allocation2 + $0x10] sm:$0xff] %vm187_vm2, %v159_v40  ;;  %v2066_v41 = vpop.f32.mrb[4].mxu0 }
  0xe1   :  { %v174_v42 = vadd.f32 %v2066_v41, %v1863_v23  ;;  %v168_v43 = vpop.f32.mrb[5].mxu0 }
  0xe2   :  { %v169_v44 = vadd.f32 %v1863_v23, %v168_v43  ;;  %v288_v49 = vld [vmem:[#allocation2 + $0x8] sm:$0xff] }
  0xe3   :  { %v208_v29 = vld [vmem:[#allocation2] sm:$0xff]  ;;  %193 = vst.msk [vmem:[#allocation2 + $0x28] sm:$0xff] %vm187_vm2, %v174_v42 }
  0xe4   :  { %192 = vst.msk [vmem:[#allocation2 + $0x20] sm:$0xff] %vm187_vm2, %v169_v44  ;;  %v2069_v45 = vpop.f32.mrb[6].mxu0 }
  0xe5   :  { %v184_v46 = vadd.f32 %v2069_v45, %v1863_v23  ;;  %v178_v47 = vpop.f32.mrb[7].mxu0 }
  0xe6   :  { %v179_v48 = vadd.f32 %v1863_v23, %v178_v47  ;;  %v444_v59 = vld [vmem:[#allocation2 + $0x18] sm:$0xff]  ;;  %v846_v23 = vld [vmem:[%s3076_s4 + $0x20] sm:$0xff] }
  0xe7   :  { %v278_v30 = vpop.f32.mrb[0].mxu1  ;;  %195 = vst.msk [vmem:[#allocation2 + $0x38] sm:$0xff] %vm187_vm2, %v184_v46  ;;  %v366_v54 = vld [vmem:[#allocation2 + $0x10] sm:$0xff]  ;;  %v2483_v25 = vpack.c.bf16 %v847_v24, %v846_v23 }
  0xe8   :  { %v282_v32 = vadd.f32 %v278_v30, %v208_v29  ;;  %v2088_v33 = vpop.f32.mrb[1].mxu1  ;;  %194 = vst.msk [vmem:[#allocation2 + $0x30] sm:$0xff] %vm187_vm2, %v179_v48  ;;  %v995_v29 = vld [vmem:[%s3077_s5] sm:$0xff]  ;;  %v996_v30 = vld [vmem:[%s3077_s5 + $0x8] sm:$0xff] }
  0xe9   :  { %v2908_v31 = vpack.c.bf16 %v996_v30, %v995_v29  ;;  %v998_v33 = vld [vmem:[%s3077_s5 + $0x18] sm:$0xff] }
  0xea   :  { %2567 = vtanh.f32 %v282_v32  ;;  %v600_v8 = vld [vmem:[#allocation2 + $0x28] sm:$0xff]  ;;  %v997_v32 = vld [vmem:[%s3077_s5 + $0x10] sm:$0xff] }
  0xeb   :  { %v522_v1 = vld [vmem:[#allocation2 + $0x20] sm:$0xff] }
  0xee   :  { %v756_v37 = vld [vmem:[#allocation2 + $0x38] sm:$0xff] }
  0xf4   :  { %v2568_v36 = vpop.eup %2567 }
  0xf5   :  { %285 = vst.msk [vmem:[#allocation3] sm:$0xff] %vm2776_vm6, %v2568_v36  ;;  %2106 = vmatmul.mubr.msk.f32.vlgmr.msra.gmra.mrb[8].mxu0 %vm187_vm2, %v2568_v36 }
  0xf6   :  { %287 = vst.msk [vmem:[#allocation3 + $0x38] sm:$0xff] %vm2781_vm7, %v2568_v36  ;;  %2417 = vmatpush3.bf16.msra.mxu0 %v2682_v5  ;;  %2143 = vmatprep.mubr.msk.f32.mxu0 %vm2602_vm1, %v2603_v4  ;;  %v2918_v36 = vpack.c.bf16 %v998_v33, %v997_v32  ;;  %v1607_v33 = vld [vmem:[%s3079_s7] sm:$0xff] }
  0xf7   :  { %2418 = vmatprep.subr.bf16.mxu0 %v2601_v0 }
  0xfa   :  { %2420 = vmatpush3.bf16.msra.mxu0 %v2699_v10 }
  0xfb   :  { %2421 = vmatprep.subr.bf16.mxu0 %v2601_v0 }
  0xfe   :  { %2423 = vmatpush3.bf16.msra.mxu0 %v2712_v13 }
  0xff   :  { %2424 = vmatprep.subr.bf16.mxu0 %v2601_v0 }
 0x102   :  { %2426 = vmatpush3.bf16.msra.mxu0 %v2724_v16 }
 0x103   :  { %2439 = vmatprep.subr.bf16.mxu0 %v2601_v0 }
 0x1c8   :  { %v358_v50 = vpop.f32.mrb[8].mxu0 }
 0x1c9   :  { %v362_v51 = vadd.f32 %v358_v50, %v288_v49  ;;  %v2107_v52 = vpop.f32.mrb[9].mxu0  ;;  %v1879_v50 = vld [vmem:[%s3078_s6] ss:$0 sm:$0xff] }
 0x1cb   :  { %2569 = vtanh.f32 %v362_v51 }
 0x1d5   :  { %v2570_v53 = vpop.eup %2569 }
 0x1d6   :  { %364 = vst.msk [vmem:[#allocation3 + $0x8] sm:$0xff] %vm2776_vm6, %v2570_v53  ;;  %2125 = vmatmul.mubr.msk.f32.vlgmr.msra.gmra.mrb[2].mxu1 %vm187_vm2, %v2570_v53 }
 0x1d7   :  { %365 = vst.msk [vmem:[#allocation3 + $0x30] sm:$0xff] %vm2781_vm7, %v2570_v53  ;;  %2429 = vmatpush3.bf16.msra.mxu1 %v2682_v5  ;;  %2162 = vmatprep.mubr.msk.f32.mxu1 %vm2602_vm1, %v2603_v4 }
 0x1d8   :  { %2430 = vmatprep.subr.bf16.mxu1 %v2601_v0 }
 0x1db   :  { %2432 = vmatpush3.bf16.msra.mxu1 %v2699_v10 }
 0x1dc   :  { %2433 = vmatprep.subr.bf16.mxu1 %v2601_v0 }
 0x1df   :  { %2435 = vmatpush3.bf16.msra.mxu1 %v2712_v13 }
 0x1e0   :  { %2436 = vmatprep.subr.bf16.mxu1 %v2601_v0 }
 0x1e3   :  { %2438 = vmatpush3.bf16.msra.mxu1 %v2724_v16 }
 0x1e4   :  { %2451 = vmatprep.subr.bf16.mxu1 %v2601_v0 }
 0x2a9   :  { %v436_v55 = vpop.f32.mrb[2].mxu1 }
 0x2aa   :  { %v440_v56 = vadd.f32 %v436_v55, %v366_v54  ;;  %v2126_v57 = vpop.f32.mrb[3].mxu1 }
 0x2ac   :  { %2571 = vtanh.f32 %v440_v56 }
 0x2b6   :  { %v2572_v58 = vpop.eup %2571 }
 0x2b7   :  { %442 = vst.msk [vmem:[#allocation3 + $0x10] sm:$0xff] %vm2776_vm6, %v2572_v58  ;;  %2144 = vmatmul.mubr.msk.f32.vlgmr.msra.gmra.mrb[10].mxu0 %vm187_vm2, %v2572_v58 }
 0x2b8   :  { %443 = vst.msk [vmem:[#allocation3 + $0x28] sm:$0xff] %vm2781_vm7, %v2572_v58  ;;  %2441 = vmatpush3.bf16.msra.mxu0 %v2682_v5  ;;  %2181 = vmatprep.mubr.msk.f32.mxu0 %vm2602_vm1, %v2603_v4 }
 0x2b9   :  { %2442 = vmatprep.subr.bf16.mxu0 %v2601_v0 }
 0x2bc   :  { %2444 = vmatpush3.bf16.msra.mxu0 %v2699_v10 }
 0x2bd   :  { %2445 = vmatprep.subr.bf16.mxu0 %v2601_v0 }
 0x2c0   :  { %2447 = vmatpush3.bf16.msra.mxu0 %v2712_v13 }
 0x2c1   :  { %2448 = vmatprep.subr.bf16.mxu0 %v2601_v0 }
 0x2c4   :  { %2450 = vmatpush3.bf16.msra.mxu0 %v2724_v16 }
 0x2c5   :  { %2463 = vmatprep.subr.bf16.mxu0 %v2601_v0 }
 0x38a   :  { %v514_v60 = vpop.f32.mrb[10].mxu0 }
 0x38b   :  { %v518_v61 = vadd.f32 %v514_v60, %v444_v59  ;;  %v2145_v62 = vpop.f32.mrb[11].mxu0 }
 0x38d   :  { %2573 = vtanh.f32 %v518_v61 }
 0x397   :  { %v2574_v63 = vpop.eup %2573 }
 0x398   :  { %520 = vst.msk [vmem:[#allocation3 + $0x18] sm:$0xff] %vm2776_vm6, %v2574_v63  ;;  %2163 = vmatmul.mubr.msk.f32.vlgmr.msra.gmra.mrb[4].mxu1 %vm187_vm2, %v2574_v63 }
 0x399   :  { %521 = vst.msk [vmem:[#allocation3 + $0x20] sm:$0xff] %vm2781_vm7, %v2574_v63  ;;  %2453 = vmatpush3.bf16.msra.mxu1 %v2682_v5  ;;  %2200 = vmatprep.mubr.msk.f32.mxu1 %vm2602_vm1, %v2603_v4 }
 0x39a   :  { %2454 = vmatprep.subr.bf16.mxu1 %v2601_v0 }
 0x39d   :  { %2456 = vmatpush3.bf16.msra.mxu1 %v2699_v10 }
 0x39e   :  { %2457 = vmatprep.subr.bf16.mxu1 %v2601_v0 }
 0x3a1   :  { %2459 = vmatpush3.bf16.msra.mxu1 %v2712_v13 }
 0x3a2   :  { %2460 = vmatprep.subr.bf16.mxu1 %v2601_v0 }
 0x3a5   :  { %2462 = vmatpush3.bf16.msra.mxu1 %v2724_v16 }
 0x3a6   :  { %2476 = vmatprep.subr.bf16.mxu1 %v2475_v19 }
 0x46b   :  { %v592_v2 = vpop.f32.mrb[4].mxu1 }
 0x46c   :  { %v596_v3 = vadd.f32 %v592_v2, %v522_v1  ;;  %v2164_v6 = vpop.f32.mrb[5].mxu1 }
 0x46e   :  { %2575 = vtanh.f32 %v596_v3 }
 0x478   :  { %v2576_v7 = vpop.eup %2575 }
 0x479   :  { %598 = vst.msk [vmem:[#allocation3 + $0x20] sm:$0xff] %vm2776_vm6, %v2576_v7  ;;  %2182 = vmatmul.mubr.msk.f32.vlgmr.msra.gmra.mrb[12].mxu0 %vm187_vm2, %v2576_v7 }
 0x47a   :  { %599 = vst.msk [vmem:[#allocation3 + $0x18] sm:$0xff] %vm2781_vm7, %v2576_v7  ;;  %2465 = vmatpush3.bf16.msra.mxu0 %v2682_v5  ;;  %2219 = vmatprep.mubr.msk.f32.mxu0 %vm2602_vm1, %v2603_v4 }
 0x47b   :  { %2466 = vmatprep.subr.bf16.mxu0 %v2601_v0 }
 0x47e   :  { %2468 = vmatpush3.bf16.msra.mxu0 %v2699_v10  ;;  %v678_v10 = vld [vmem:[#allocation2 + $0x30] sm:$0xff] }
 0x47f   :  { %2469 = vmatprep.subr.bf16.mxu0 %v2601_v0 }
 0x480   :  { %v838_v34 = vld [vmem:[#allocation3 + $0x20] sm:$0xff] }
 0x481   :  { %v837_v45 = vld [vmem:[#allocation3 + $0x18] sm:$0xff] }
 0x482   :  { %2471 = vmatpush3.bf16.msra.mxu0 %v2712_v13 }
 0x483   :  { %2472 = vmatprep.subr.bf16.mxu0 %v2601_v0 }
 0x486   :  { %2474 = vmatpush3.bf16.msra.mxu0 %v2724_v16 }
 0x487   :  { %2491 = vmatprep.subr.bf16.mxu0 %v2601_v0 }
 0x54c   :  { %v670_v9 = vpop.f32.mrb[12].mxu0 }
 0x54d   :  { %v674_v5 = vadd.f32 %v670_v9, %v600_v8  ;;  %v2183_v11 = vpop.f32.mrb[13].mxu0 }
 0x54f   :  { %2577 = vtanh.f32 %v674_v5 }
 0x559   :  { %v2578_v12 = vpop.eup %2577 }
 0x55a   :  { %676 = vst.msk [vmem:[#allocation3 + $0x28] sm:$0xff] %vm2776_vm6, %v2578_v12  ;;  %2201 = vmatmul.mubr.msk.f32.vlgmr.msra.gmra.mrb[6].mxu1 %vm187_vm2, %v2578_v12 }
 0x55b   :  { %677 = vst.msk [vmem:[#allocation3 + $0x10] sm:$0xff] %vm2781_vm7, %v2578_v12  ;;  %2478 = vmatpush3.bf16.msra.mxu1 %v2475_v19 }
 0x55c   :  { %2480 = vmatprep.subr.bf16.mxu1 %v2479_v22 }
 0x55f   :  { %2482 = vmatpush3.bf16.msra.mxu1 %v2479_v22 }
 0x560   :  { %2484 = vmatprep.subr.bf16.mxu1 %v2483_v25 }
 0x561   :  { %v839_v35 = vld [vmem:[#allocation3 + $0x28] sm:$0xff] }
 0x562   :  { %v836_v44 = vld [vmem:[#allocation3 + $0x10] sm:$0xff] }
 0x563   :  { %2486 = vmatpush3.bf16.msra.mxu1 %v2483_v25 }
 0x564   :  { %2488 = vmatprep.subr.bf16.mxu1 %v2487_v28 }
 0x567   :  { %2490 = vmatpush3.bf16.msra.mxu1 %v2487_v28 }
 0x568   :  { %2509 = vmatprep.subr.bf16.mxu1 %v2601_v0 }
 0x62d   :  { %v748_v13 = vpop.f32.mrb[6].mxu1 }
 0x62e   :  { %v752_v14 = vadd.f32 %v748_v13, %v678_v10  ;;  %v2202_v15 = vpop.f32.mrb[7].mxu1 }
 0x630   :  { %2579 = vtanh.f32 %v752_v14 }
 0x63a   :  { %v2580_v16 = vpop.eup %2579 }
 0x63b   :  { %754 = vst.msk [vmem:[#allocation3 + $0x30] sm:$0xff] %vm2776_vm6, %v2580_v16  ;;  %2220 = vmatmul.mubr.msk.f32.vlgmr.msra.gmra.mrb[14].mxu0 %vm187_vm2, %v2580_v16 }
 0x63c   :  { %755 = vst.msk [vmem:[#allocation3 + $0x8] sm:$0xff] %vm2781_vm7, %v2580_v16  ;;  %2258 = vmatprep.mubr.msk.f32.mxu0 %vm2602_vm1, %v2603_v4  ;;  %2493 = vmatpush3.bf16.msra.mxu0 %v2908_v31 }
 0x63d   :  { %2494 = vmatprep.subr.bf16.mxu0 %v2601_v0 }
 0x640   :  { %2496 = vmatpush3.bf16.msra.mxu0 %v2918_v36 }
 0x641   :  { %2497 = vmatprep.subr.bf16.mxu0 %v2601_v0 }
 0x642   :  { %v840_v46 = vld [vmem:[#allocation3 + $0x30] sm:$0xff] }
 0x643   :  { %2259 = vmatmul.mubr.f32.vlgmr.msra.gmra.mrb[16].mxu0 %v2603_v4  ;;  %v835_v43 = vld [vmem:[#allocation3 + $0x8] sm:$0xff] }
 0x644   :  { %2499 = vmatpush3.bf16.msra.mxu0 %v2908_v31  ;;  %2269 = vmatprep.mubr.msk.f32.mxu0 %vm2602_vm1, %v2603_v4 }
 0x645   :  { %2500 = vmatprep.subr.bf16.mxu0 %v2601_v0 }
 0x648   :  { %2502 = vmatpush3.bf16.msra.mxu0 %v2918_v36 }
 0x649   :  { %2503 = vmatprep.subr.bf16.mxu0 %v2601_v0 }
 0x70e   :  { %v826_v38 = vpop.f32.mrb[14].mxu0 }
 0x70f   :  { %v830_v39 = vadd.f32 %v826_v38, %v756_v37  ;;  %v2221_v40 = vpop.f32.mrb[15].mxu0  ;;  %v1610_v38 = vld [vmem:[%s3079_s7 + $0x18] sm:$0xff] }
 0x711   :  { %2581 = vtanh.f32 %v830_v39 }
 0x716   :  { %v1068_v48 = vpop.f32.mrb[16].mxu0 }
 0x717   :  { %v2260_v49 = vpop.f32.mrb[17].mxu0 }
 0x71b   :  { %v2582_v41 = vpop.eup %2581 }
 0x71c   :  { %832 = vst.msk [vmem:[#allocation3 + $0x38] sm:$0xff] %vm2776_vm6, %v2582_v41 }
 0x71d   :  { %833 = vst.msk [vmem:[#allocation3] sm:$0xff] %vm2781_vm7, %v2582_v41  ;;  %v1611_v41 = vld [vmem:[%s3079_s7 + $0x20] sm:$0xff] }
 0x723   :  { %v2944_v47 = vld [vmem:[#allocation3 + $0x38] sm:$0xff] }
 0x724   :  { %v834_v42 = vld [vmem:[#allocation3] sm:$0xff] }
 0x725   :  { %2238 = vmatprep.mubr.msk.f32.mxu1 %vm187_vm2, %v834_v42  ;;  %v1612_v42 = vld [vmem:[%s3079_s7 + $0x28] sm:$0xff] }
 0x726   :  { %2239 = vmatmul.mubr.msk.f32.vlgmr.msra.gmra.mrb[8].mxu1 %vm187_vm2, %v835_v43  ;;  %v2546_v43 = vpack.c.bf16 %v1612_v42, %v1611_v41 }
 0x727   :  { %2241 = vmatprep.mubr.msk.f32.mxu1 %vm187_vm2, %v836_v44  ;;  %2511 = vmatpush3.bf16.msra.mxu1 %v2908_v31  ;;  %v1613_v44 = vld [vmem:[%s3079_s7 + $0x30] sm:$0xff] }
 0x728   :  { %2512 = vmatprep.subr.bf16.mxu1 %v2601_v0 }
 0x72a   :  { %2242 = vmatmul.mubr.msk.f32.gmra.mrb[10].mxu1 %vm187_vm2, %v837_v45  ;;  %v1614_v45 = vld [vmem:[%s3079_s7 + $0x38] sm:$0xff] }
 0x72b   :  { %2244 = vmatprep.mubr.msk.f32.mxu1 %vm187_vm2, %v838_v34  ;;  %2514 = vmatpush3.bf16.msra.mxu1 %v2918_v36  ;;  %v2549_v34 = vpack.c.bf16 %v1614_v45, %v1613_v44 }
 0x72c   :  { %2521 = vmatprep.subr.bf16.mxu1 %v2601_v0 }
 0x72e   :  { %2245 = vmatmul.mubr.msk.f32.gmra.mrb[12].mxu1 %vm187_vm2, %v839_v35 }
 0x72f   :  { %2247 = vmatprep.mubr.msk.f32.mxu1 %vm187_vm2, %v840_v46 }
 0x732   :  { %2248 = vmatmul.mubr.msk.f32.gmra.mrb[14].mxu1 %vm187_vm2, %v2944_v47 }
 0x733   :  { %2291 = vmatprep.mubr.msk.f32.mxu1 %vm2602_vm1, %v2603_v4 }
 0x7f9   :  { %v2240_v51 = vpop.f32.mrb[8].mxu1 }
 0x7fa   :  { %v953_v52 = vadd.f32 %v2240_v51, %v1879_v50  ;;  %v947_v53 = vpop.f32.mrb[9].mxu1  ;;  %v1701_v51 = vld [vmem:[%s3080_s10 + $0x8] sm:$0xff] }
 0x7fb   :  { %v948_v54 = vadd.f32 %v1879_v50, %v947_v53  ;;  %v1702_v53 = vld [vmem:[%s3080_s10 + $0x10] sm:$0xff] }
 0x7fc   :  { %988 = vst.msk [vmem:[#allocation4 + $0x8] sm:$0xff] %vm986_vm8, %v953_v52 }
 0x7fd   :  { %987 = vst.msk [vmem:[#allocation4] sm:$0xff] %vm986_vm8, %v948_v54  ;;  %v2243_v55 = vpop.f32.mrb[10].mxu1 }
 0x7fe   :  { %v963_v56 = vadd.f32 %v2243_v55, %v1879_v50  ;;  %v957_v57 = vpop.f32.mrb[11].mxu1  ;;  %v1895_v55 = vld [vmem:[%s3081_s8] ss:$0 sm:$0xff] }
 0x7ff   :  { %v958_v58 = vadd.f32 %v1879_v50, %v957_v57 }
 0x800   :  { %990 = vst.msk [vmem:[#allocation4 + $0x18] sm:$0xff] %vm986_vm8, %v963_v56 }
 0x801   :  { %989 = vst.msk [vmem:[#allocation4 + $0x10] sm:$0xff] %vm986_vm8, %v958_v58  ;;  %v2246_v59 = vpop.f32.mrb[12].mxu1 }
 0x802   :  { %v973_v60 = vadd.f32 %v2246_v59, %v1879_v50  ;;  %v967_v61 = vpop.f32.mrb[13].mxu1 }
 0x803   :  { %v968_v62 = vadd.f32 %v1879_v50, %v967_v61  ;;  %v1074_v9 = vld [vmem:[#allocation4 + $0x8] sm:$0xff]  ;;  %v1696_v61 = vld [vmem:[%s3082_s9] sm:$0xff] }
 0x804   :  { %992 = vst.msk [vmem:[#allocation4 + $0x28] sm:$0xff] %vm986_vm8, %v973_v60  ;;  %v999_v63 = vld [vmem:[#allocation4] sm:$0xff] }
 0x805   :  { %991 = vst.msk [vmem:[#allocation4 + $0x20] sm:$0xff] %vm986_vm8, %v968_v62  ;;  %v1072_v1 = vadd.f32 %v1068_v48, %v999_v63  ;;  %v2249_v2 = vpop.f32.mrb[14].mxu1  ;;  %v1697_v62 = vld [vmem:[%s3082_s9 + $0x8] sm:$0xff]  ;;  %v1698_v63 = vld [vmem:[%s3082_s9 + $0x10] sm:$0xff] }
 0x806   :  { %v983_v3 = vadd.f32 %v2249_v2, %v1879_v50  ;;  %v977_v6 = vpop.f32.mrb[15].mxu1  ;;  %v1699_v2 = vld [vmem:[%s3082_s9 + $0x18] sm:$0xff] }
 0x807   :  { %2583 = vtanh.f32 %v1072_v1  ;;  %v978_v7 = vadd.f32 %v1879_v50, %v977_v6  ;;  %v1226_v18 = vld [vmem:[#allocation4 + $0x18] sm:$0xff]  ;;  %v1700_v50 = vld [vmem:[%s3080_s10] sm:$0xff]  ;;  %v2558_v1 = vpack.c.bf16 %v1697_v62, %v1696_v61 }
 0x808   :  { %994 = vst.msk [vmem:[#allocation4 + $0x38] sm:$0xff] %vm986_vm8, %v983_v3  ;;  %v1150_v13 = vld [vmem:[#allocation4 + $0x10] sm:$0xff]  ;;  %v2552_v52 = vpack.c.bf16 %v1701_v51, %v1700_v50  ;;  %v2561_v3 = vpack.c.bf16 %v1699_v2, %v1698_v63 }
 0x809   :  { %993 = vst.msk [vmem:[#allocation4 + $0x30] sm:$0xff] %vm986_vm8, %v978_v7 }
 0x80b   :  { %v1378_v28 = vld [vmem:[#allocation4 + $0x28] sm:$0xff] }
 0x80c   :  { %v1302_v23 = vld [vmem:[#allocation4 + $0x20] sm:$0xff] }
 0x810   :  { %v1454_v35 = vld [vmem:[#allocation4 + $0x30] sm:$0xff] }
 0x811   :  { %v2584_v8 = vpop.eup %2583 }
 0x812   :  { %2270 = vmatmul.mubr.msk.f32.vlgmr.msra.gmra.mrb[18].mxu0 %vm986_vm8, %v2584_v8 }
 0x813   :  { %2505 = vmatpush3.bf16.msra.mxu0 %v2908_v31  ;;  %2280 = vmatprep.mubr.msk.f32.mxu0 %vm2602_vm1, %v2603_v4 }
 0x814   :  { %2506 = vmatprep.subr.bf16.mxu0 %v2601_v0 }
 0x817   :  { %2508 = vmatpush3.bf16.msra.mxu0 %v2918_v36 }
 0x818   :  { %2515 = vmatprep.subr.bf16.mxu0 %v2601_v0 }
 0x8e5   :  { %v1144_v5 = vpop.f32.mrb[18].mxu0 }
 0x8e6   :  { %v1148_v11 = vadd.f32 %v1144_v5, %v1074_v9  ;;  %v2271_v12 = vpop.f32.mrb[19].mxu0 }
 0x8e8   :  { %2585 = vtanh.f32 %v1148_v11 }
 0x8f2   :  { %v2586_v10 = vpop.eup %2585 }
 0x8f3   :  { %2281 = vmatmul.mubr.msk.f32.vlgmr.msra.gmra.mrb[20].mxu0 %vm986_vm8, %v2586_v10  ;;  %v1899_v10 = vld [vmem:[%s3083_s11] ss:$0 sm:$0xff] }
 0x8f4   :  { %2517 = vmatpush3.bf16.msra.mxu0 %v2908_v31  ;;  %2302 = vmatprep.mubr.msk.f32.mxu0 %vm2602_vm1, %v2603_v4 }
 0x8f5   :  { %2518 = vmatprep.subr.bf16.mxu0 %v2601_v0 }
 0x8f8   :  { %2520 = vmatpush3.bf16.msra.mxu0 %v2918_v36 }
 0x8f9   :  { %2527 = vmatprep.subr.bf16.mxu0 %v2601_v0 }
 0x9c6   :  { %v1220_v14 = vpop.f32.mrb[20].mxu0 }
 0x9c7   :  { %v1224_v15 = vadd.f32 %v1220_v14, %v1150_v13  ;;  %v2282_v16 = vpop.f32.mrb[21].mxu0 }
 0x9c9   :  { %2587 = vtanh.f32 %v1224_v15 }
 0x9d3   :  { %v2588_v17 = vpop.eup %2587 }
 0x9d4   :  { %2292 = vmatmul.mubr.msk.f32.vlgmr.msra.gmra.mrb[16].mxu1 %vm986_vm8, %v2588_v17 }
 0x9d5   :  { %2523 = vmatpush3.bf16.msra.mxu1 %v2908_v31  ;;  %2313 = vmatprep.mubr.msk.f32.mxu1 %vm2602_vm1, %v2603_v4 }
 0x9d6   :  { %2524 = vmatprep.subr.bf16.mxu1 %v2601_v0 }
 0x9d9   :  { %2526 = vmatpush3.bf16.msra.mxu1 %v2918_v36 }
 0x9da   :  { %2533 = vmatprep.subr.bf16.mxu1 %v2601_v0 }
 0xaa7   :  { %v1296_v19 = vpop.f32.mrb[16].mxu1 }
 0xaa8   :  { %v1300_v20 = vadd.f32 %v1296_v19, %v1226_v18  ;;  %v2293_v21 = vpop.f32.mrb[17].mxu1 }
 0xaaa   :  { %2589 = vtanh.f32 %v1300_v20 }
 0xab4   :  { %v2590_v22 = vpop.eup %2589 }
 0xab5   :  { %2303 = vmatmul.mubr.msk.f32.vlgmr.msra.gmra.mrb[22].mxu0 %vm986_vm8, %v2590_v22 }
 0xab6   :  { %2529 = vmatpush3.bf16.msra.mxu0 %v2908_v31  ;;  %2324 = vmatprep.mubr.msk.f32.mxu0 %vm2602_vm1, %v2603_v4 }
 0xab7   :  { %2530 = vmatprep.subr.bf16.mxu0 %v2601_v0 }
 0xaba   :  { %2532 = vmatpush3.bf16.msra.mxu0 %v2918_v36 }
 0xabb   :  { %2539 = vmatprep.subr.bf16.mxu0 %v2601_v0 }
 0xb88   :  { %v1372_v24 = vpop.f32.mrb[22].mxu0 }
 0xb89   :  { %v1376_v25 = vadd.f32 %v1372_v24, %v1302_v23  ;;  %v2304_v26 = vpop.f32.mrb[23].mxu0 }
 0xb8b   :  { %2591 = vtanh.f32 %v1376_v25 }
 0xb95   :  { %v2592_v27 = vpop.eup %2591 }
 0xb96   :  { %2314 = vmatmul.mubr.msk.f32.vlgmr.msra.gmra.mrb[18].mxu1 %vm986_vm8, %v2592_v27 }
 0xb97   :  { %2535 = vmatpush3.bf16.msra.mxu1 %v2908_v31  ;;  %2335 = vmatprep.mubr.msk.f32.mxu1 %vm2602_vm1, %v2603_v4  ;;  %v1608_v31 = vld [vmem:[%s3079_s7 + $0x8] sm:$0xff] }
 0xb98   :  { %2536 = vmatprep.subr.bf16.mxu1 %v2601_v0  ;;  %v2540_v37 = vpack.c.bf16 %v1608_v31, %v1607_v33 }
 0xb9b   :  { %2538 = vmatpush3.bf16.msra.mxu1 %v2918_v36  ;;  %v1609_v36 = vld [vmem:[%s3079_s7 + $0x10] sm:$0xff] }
 0xb9c   :  { %2551 = vmatprep.subr.bf16.mxu1 %v2601_v0  ;;  %v2543_v40 = vpack.c.bf16 %v1610_v38, %v1609_v36 }
 0xc69   :  { %v1448_v29 = vpop.f32.mrb[18].mxu1 }
 0xc6a   :  { %v1452_v30 = vadd.f32 %v1448_v29, %v1378_v28  ;;  %v2315_v32 = vpop.f32.mrb[19].mxu1 }
 0xc6c   :  { %2593 = vtanh.f32 %v1452_v30 }
 0xc76   :  { %v2594_v39 = vpop.eup %2593 }
 0xc77   :  { %2325 = vmatmul.mubr.msk.f32.vlgmr.msra.gmra.mrb[24].mxu0 %vm986_vm8, %v2594_v39 }
 0xc78   :  { %2541 = vmatpush3.bf16.msra.mxu0 %v2540_v37  ;;  %2354 = vmatprep.mubr.msk.f32.mxu0 %vm2602_vm1, %v2603_v4 }
 0xc79   :  { %2542 = vmatprep.subr.bf16.mxu0 %v2601_v0 }
 0xc7c   :  { %2544 = vmatpush3.bf16.msra.mxu0 %v2543_v40 }
 0xc7d   :  { %2545 = vmatprep.subr.bf16.mxu0 %v2601_v0 }
 0xc80   :  { %2547 = vmatpush3.bf16.msra.mxu0 %v2546_v43 }
 0xc81   :  { %2548 = vmatprep.subr.bf16.mxu0 %v2601_v0 }
 0xc84   :  { %2550 = vmatpush3.bf16.msra.mxu0 %v2549_v34 }
 0xc87   :  { %2355 = vmatmul.mubr.msk.f32.vlgmr.msra.gmra.mrb[26].mxu0 %vm187_vm2, %v2944_v47  ;;  %v1703_v47 = vld [vmem:[%s3080_s10 + $0x18] sm:$0xff] }
 0xc88   :  { %v2555_v56 = vpack.c.bf16 %v1703_v47, %v1702_v53 }
 0xd4a   :  { %v1524_v46 = vpop.f32.mrb[24].mxu0 }
 0xd4b   :  { %v1528_v48 = vadd.f32 %v1524_v46, %v1454_v35  ;;  %v2326_v49 = vpop.f32.mrb[25].mxu0 }
 0xd4d   :  { %2595 = vtanh.f32 %v1528_v48 }
 0xd57   :  { %v2596_v54 = vpop.eup %2595 }
 0xd58   :  { %2336 = vmatmul.mubr.msk.f32.vlgmr.msra.gmra.mrb[20].mxu1 %vm986_vm8, %v2596_v54 }
 0xd59   :  { %2553 = vmatpush3.bf16.msra.mxu1 %v2552_v52  ;;  %2365 = vmatprep.mubr.msk.f32.mxu1 %vm2602_vm1, %v2603_v4 }
 0xd5a   :  { %v1691_v57 = vpop.f32.mrb[26].mxu0  ;;  %2554 = vmatprep.subr.bf16.mxu1 %v2601_v0 }
 0xd5b   :  { %v1692_v58 = vadd.f32 %v1895_v55, %v1691_v57  ;;  %v2356_v59 = vpop.f32.mrb[27].mxu0 }
 0xd5d   :  { %2597 = vtanh.f32 %v1692_v58  ;;  %2556 = vmatpush3.bf16.msra.mxu1 %v2555_v56 }
 0xd5e   :  { %2557 = vmatprep.subr.bf16.mxu1 %v2601_v0 }
 0xd67   :  { %v2598_v60 = vpop.eup %2597 }
 0xd68   :  { %2366 = vmatmul.mubr.msk.f32.vlgmr.msra.gmra.mrb[22].mxu1 %vm986_vm8, %v2598_v60 }
 0xd69   :  { %2376 = vmatprep.mubr.msk.f32.mxu1 %vm2602_vm1, %v2603_v4  ;;  %2559 = vmatpush3.bf16.msra.mxu1 %v2558_v1  ;;  %v1530_v4 = vld [vmem:[#allocation4 + $0x38] sm:$0xff] }
 0xd6a   :  { %2560 = vmatprep.subr.bf16.mxu1 %v2601_v0 }
 0xd6d   :  { %2562 = vmatpush3.bf16.msra.mxu1 %v2561_v3 }
 0xe2b   :  { %v1600_v6 = vpop.f32.mrb[20].mxu1 }
 0xe2c   :  { %v1604_v7 = vadd.f32 %v1600_v6, %v1530_v4  ;;  %v2337_v8 = vpop.f32.mrb[21].mxu1 }
 0xe2e   :  { %2599 = vtanh.f32 %v1604_v7 }
 0xe38   :  { %v2600_v9 = vpop.eup %2599 }
 0xe39   :  { %2377 = vmatmul.mubr.msk.f32.vlgmr.msra.gmra.mrb[24].mxu1 %vm986_vm8, %v2600_v9 }
 0xe3b   :  { %v1773_v5 = vpop.f32.mrb[22].mxu1 }
 0xe3c   :  { %v2367_v11 = vpop.f32.mrb[23].mxu1 }
 0xf0c   :  { %v1846_v12 = vpop.f32.mrb[24].mxu1 }
 0xf0d   :  { %v1847_v13 = vadd.f32 %v1846_v12, %v1773_v5  ;;  %v2378_v14 = vpop.f32.mrb[25].mxu1 }
 0xf0f   :  { %v1857_v15 = vadd.f32 %v1899_v10, %v1847_v13 }
 0xf11   :  { %1858 = vst.msk [vmem:[%s3084_s12] sm:$0xff] %vm57_vm0, %v1857_v15 }

</bundles_post_ra>
